<compile_context>
chip_gen: v7x
topology: tpu7x:2x2x1
jax: 0.10.0
libtpu: 0.0.40
codegen_flags: <defaults>
</compile_context>

<pallas_src>
import math
import numpy as np

import jax
import jax.numpy as jnp
from jax.experimental import pallas as pl
from jax.experimental.pallas import tpu as pltpu


_VMEM_LIMIT = 32 * 1024 * 1024  # explicit scoped-VMEM budget; safe on v5e/v6e/v7x


def _round_up(x, m):
    return ((x + m - 1) // m) * m


def _pick_row_tile(m, pref=1024, mult=16):
    """Largest row tile (amortize ~0.35us/step grid overhead) that still leaves
    >=2 grid steps when m allows, so v7x's two TensorCores both get work."""
    m = max(int(m), 1)
    if m <= 2 * mult:
        return _round_up(m, mult)
    return min(pref, _round_up((m + 1) // 2, mult))


# ----------------------------- Pallas kernels ------------------------------

def _stft_kernel(frames_ref, dft_ref, spec_ref):
    # frames: [TM, n_fft] bf16; dft: [n_fft, 2*Kpad] bf16 = [win*cos | -win*sin]
    # one fused bf16 MXU pass -> lane-dense f32 [TM, 2*Kpad] (re | im) output slab.
    spec_ref[...] = jnp.dot(frames_ref[...], dft_ref[...],
                            preferred_element_type=jnp.float32)


def _istft_kernel(mag_ref, ph_ref, icos_ref, isin_ref, out_ref):
    # mag/ph stay f32 (accumulated phase is large; bf16 would destroy it).
    re = (mag_ref[...] * jnp.cos(ph_ref[...])).astype(jnp.bfloat16)   # EUP
    im = (mag_ref[...] * jnp.sin(ph_ref[...])).astype(jnp.bfloat16)   # EUP
    # Two accumulated dots against the resident bf16 inverse-DFT halves
    # (no [TM, 2*Kpad] concat materialized in VMEM).
    out_ref[...] = (jnp.dot(re, icos_ref[...], preferred_element_type=jnp.float32)
                    + jnp.dot(im, isin_ref[...], preferred_element_type=jnp.float32))


# --------------------------------- wrapper ---------------------------------

def random_pitch(waveform, sample_rate=16000, n_steps_range=(-2.0, 2.0), seed=0,
                 n_fft=512, bins_per_octave=12):
    """Pitch-shift `waveform` (batch, time) by a deterministic 'random' amount."""
    waveform = waveform.astype(jnp.float32)
    B, L = waveform.shape
    hop = n_fft // 4
    K = n_fft // 2 + 1
    Kpad = _round_up(K, 128)            # 257 -> 384; 2*Kpad = 768

    # TODO(synk): host-side RNG (original module uses python random.uniform);
    # rate-dependent static shapes make the full pipeline non-jittable by design.
    n_steps = float(np.random.default_rng(seed).uniform(*n_steps_range))
    rate = 2.0 ** (-n_steps / bins_per_octave)

    cparams = pltpu.CompilerParams(dimension_semantics=("parallel",),
                                   vmem_limit_bytes=_VMEM_LIMIT)

    # ------------- STFT (hann, center, reflect pad, onesided) -------------
    n = np.arange(n_fft)
    kf = np.arange(K)
    window_np = 0.5 * (1.0 - np.cos(2.0 * np.pi * n / n_fft))   # periodic hann
    ang = 2.0 * np.pi * n[:, None] * kf[None, :] / n_fft
    dft_np = np.zeros((n_fft, 2 * Kpad), np.float32)
    dft_np[:, :K] = window_np[:, None] * np.cos(ang)            # window folded in
    dft_np[:, Kpad:Kpad + K] = -window_np[:, None] * np.sin(ang)
    dft = jnp.asarray(dft_np).astype(jnp.bfloat16)              # bf16 MXU operand

    # Gather-free framing: hop == n_fft/4, so every frame is 4 consecutive
    # hop-blocks of the padded signal -> 4 dense slices + concat, no XLA gather.
    # TODO(synk): a true overlapping-window DMA over `padded` would also remove
    # the 4x framed copy (now bf16, so 2x bytes of the old f32 copy).
    padded = jnp.pad(waveform, ((0, 0), (n_fft // 2, n_fft // 2)), mode="reflect")
    n_frames = 1 + L // hop
    Lb = _round_up(padded.shape[1], hop)
    blocks = jnp.pad(padded, ((0, 0), (0, Lb - padded.shape[1]))).reshape(B, Lb // hop, hop)
    frames = jnp.concatenate([blocks[:, q:q + n_frames, :] for q in range(4)], axis=-1)

    M = B * n_frames
    TM = _pick_row_tile(M)
    M_pad = _round_up(M, TM)
    frames = frames.reshape(M, n_fft).astype(jnp.bfloat16)
    frames = jnp.pad(frames, ((0, M_pad - M), (0, 0)))

    spec = pl.pallas_call(
        _stft_kernel,
        out_shape=jax.ShapeDtypeStruct((M_pad, 2 * Kpad), jnp.float32),
        grid=(M_pad // TM,),
        in_specs=[pl.BlockSpec((TM, n_fft), lambda i: (i, 0)),
                  pl.BlockSpec((n_fft, 2 * Kpad), lambda i: (0, 0))],   # resident
        out_specs=pl.BlockSpec((TM, 2 * Kpad), lambda i: (i, 0)),
        compiler_params=cparams,
    )(frames, dft)
    spec = spec[:M].reshape(B, n_frames, 2 * Kpad)
    spec_re, spec_im = spec[..., :Kpad], spec[..., Kpad:]

    # ---------------- phase vocoder time-stretch by `rate` ----------------
    # TODO(synk): data-dependent frame interpolation + sequential cumulative phase
    # kept as XLA glue; fusing into a Pallas kernel (freq-parallel grid, phase
    # accumulator in VMEM scratch, scalar-prefetched idx0/idx1) would cut ~10
    # full-spectrogram HBM round trips.
    pa = np.zeros((1, 1, Kpad), np.float32)
    pa[0, 0, :K] = np.linspace(0.0, np.pi * hop, K)
    phase_advance = jnp.asarray(pa)

    t = np.arange(0.0, n_frames, rate)
    n_out = len(t)
    alphas = jnp.asarray((t % 1.0)[None, :, None], jnp.float32)
    idx0 = t.astype(np.int64)
    idx1 = idx0 + 1

    re_p = jnp.pad(spec_re, ((0, 0), (0, 2), (0, 0)))
    im_p = jnp.pad(spec_im, ((0, 0), (0, 2), (0, 0)))
    re0, im0 = re_p[:, idx0, :], im_p[:, idx0, :]
    re1, im1 = re_p[:, idx1, :], im_p[:, idx1, :]

    angle0 = jnp.arctan2(im0, re0)
    angle1 = jnp.arctan2(im1, re1)
    norm0 = jnp.sqrt(re0 * re0 + im0 * im0)
    norm1 = jnp.sqrt(re1 * re1 + im1 * im1)

    phase0 = jnp.arctan2(spec_im[:, :1, :], spec_re[:, :1, :])
    phase = angle1 - angle0 - phase_advance
    phase = phase - 2.0 * np.pi * jnp.round(phase / (2.0 * np.pi))
    phase = phase + phase_advance
    phase = jnp.concatenate([phase0, phase[:, :-1, :]], axis=1)
    phase_acc = jnp.cumsum(phase, axis=1)
    mag = alphas * norm1 + (1.0 - alphas) * norm0

    # ---------------- ISTFT (polar->complex, two resident inverse-DFT halves) ----------------
    wk = np.ones(K)
    wk[1:-1] = 2.0                                     # onesided irfft weights
    iang = 2.0 * np.pi * kf[:, None] * n[None, :] / n_fft
    icos_np = np.zeros((Kpad, n_fft), np.float32)
    isin_np = np.zeros((Kpad, n_fft), np.float32)
    icos_np[:K, :] = (wk[:, None] * np.cos(iang) / n_fft) * window_np[None, :]
    isin_np[:K, :] = -(wk[:, None] * np.sin(iang) / n_fft) * window_np[None, :]
    icos = jnp.asarray(icos_np).astype(jnp.bfloat16)
    isin = jnp.asarray(isin_np).astype(jnp.bfloat16)

    M2 = B * n_out
    TM2 = _pick_row_tile(M2)
    M2_pad = _round_up(M2, TM2)
    mag_f = jnp.pad(mag.reshape(M2, Kpad), ((0, M2_pad - M2), (0, 0)))
    ph_f = jnp.pad(phase_acc.reshape(M2, Kpad), ((0, M2_pad - M2), (0, 0)))

    frames_t = pl.pallas_call(
        _istft_kernel,
        out_shape=jax.ShapeDtypeStruct((M2_pad, n_fft), jnp.float32),
        grid=(M2_pad // TM2,),
        in_specs=[pl.BlockSpec((TM2, Kpad), lambda i: (i, 0)),
                  pl.BlockSpec((TM2, Kpad), lambda i: (i, 0)),
                  pl.BlockSpec((Kpad, n_fft), lambda i: (0, 0)),    # resident cos half
                  pl.BlockSpec((Kpad, n_fft), lambda i: (0, 0))],   # resident sin half
        out_specs=pl.BlockSpec((TM2, n_fft), lambda i: (i, 0)),
        compiler_params=cparams,
    )(mag_f, ph_f, icos, isin)
    frames_t = frames_t[:M2].reshape(B, n_out, n_fft)

    # overlap-add: overlap factor is exactly n_fft/hop == 4 -> 4 structured
    # shifted dense adds (no duplicate-index scatter).
    ola_len = hop * (n_out + 3)            # == n_fft + hop*(n_out-1)
    y = jnp.zeros((B, ola_len), jnp.float32)
    for q in range(4):
        seg = frames_t[:, :, q * hop:(q + 1) * hop].reshape(B, n_out * hop)
        y = y + jnp.pad(seg, ((0, 0), (q * hop, (3 - q) * hop)))

    # window-envelope normalization: data independent -> reciprocal built on host.
    wsq_np = np.zeros(ola_len, np.float64)
    w2 = window_np ** 2
    for f in range(n_out):
        wsq_np[f * hop:f * hop + n_fft] += w2
    env_np = np.where(wsq_np > 1e-11, 1.0 / wsq_np, 1.0).astype(np.float32)
    y = y * jnp.asarray(env_np)[None, :]

    len_stretch = int(round(L / rate))
    y = y[:, n_fft // 2: n_fft // 2 + len_stretch]
    if y.shape[1] < len_stretch:
        y = jnp.pad(y, ((0, 0), (0, len_stretch - y.shape[1])))

    # -------- banded Hann-windowed-sinc resample back to the original rate --------
    # Equivalent numerics to the dense interpolation (lowpass_filter_width=6,
    # rolloff=0.99); the [W, 256] weight tile is synthesized in-kernel so no
    # per-tile weight slab is streamed from HBM.
    orig_freq = int(sample_rate / rate)          # matches torchaudio's int() truncation
    new_freq = sample_rate
    out_len = int(math.ceil(new_freq * len_stretch / orig_freq))
    lpfw, rolloff = 6, 0.99
    c = rolloff * min(1.0, new_freq / orig_freq)
    inv = orig_freq / new_freq                   # input samples per output sample
    s_half = lpfw / c                            # filter half-width in input samples

    TN = 256                                     # lane-dense output tile
    out_pad = _round_up(out_len, TN)
    n_blk = out_pad // TN
    W = _round_up(int(math.ceil((TN - 1) * inv + 2.0 * s_half)) + 4, 8)  # sublane-aligned band

    t_blk = np.arange(n_blk, dtype=np.float64) * (TN * inv)      # t_out at each tile start
    starts = np.maximum(0, np.floor(t_blk - s_half).astype(np.int64) - 1)
    off_q = np.round((t_blk - starts) * 65536.0).astype(np.int32)  # fixed-point 16.16 offset

    Lp = max(len_stretch, int(starts.max()) + W)
    y_pad = jnp.pad(y, ((0, 0), (0, Lp - len_stretch)))
    # TODO(synk): the band gather below still materializes a ~1.2x bf16 copy of the
    # stretched signal; a manual make_async_copy from y_pad at pl.ds(starts[j], W)
    # would stream the band directly.
    gidx = jnp.asarray(starts[:, None] + np.arange(W)[None, :], jnp.int32)
    x_band = jnp.transpose(y_pad[:, gidx], (1, 0, 2)).astype(jnp.bfloat16)  # (n_blk, B, W)

    pi = float(np.pi)
    inv_f, c_f, lpfw_f = float(inv), float(c), float(lpfw)

    def _resample_kernel(off_ref, x_ref, o_ref):
        # Synthesize the banded sinc * Hann^2 weight tile [W, TN] on the fly (VPU/EUP).
        j = pl.program_id(0)
        off = off_ref[j].astype(jnp.float32) * (1.0 / 65536.0)       # t_out[j*TN] - starts[j]
        p = jax.lax.broadcasted_iota(jnp.int32, (W, TN), 0).astype(jnp.float32)
        o = jax.lax.broadcasted_iota(jnp.int32, (W, TN), 1).astype(jnp.float32)
        x = c_f * (off + o * inv_f - p)
        pix = pi * x
        safe = jnp.where(jnp.abs(pix) < 1e-6, 1.0, pix)
        sinc = jnp.where(jnp.abs(pix) < 1e-6, 1.0, jnp.sin(pix) / safe)
        hann = jnp.cos(pix * (0.5 / lpfw_f))
        w = jnp.where(jnp.abs(x) <= lpfw_f, c_f * sinc * hann * hann, 0.0)
        o_ref[...] = jnp.dot(x_ref[0], w.astype(jnp.bfloat16),
                             preferred_element_type=jnp.float32)

    shifted = pl.pallas_call(
        _resample_kernel,
        out_shape=jax.ShapeDtypeStruct((B, out_pad), jnp.float32),
        grid_spec=pltpu.PrefetchScalarGridSpec(
            num_scalar_prefetch=1,
            grid=(n_blk,),
            in_specs=[pl.BlockSpec((1, B, W), lambda j, off: (j, 0, 0))],
            out_specs=pl.BlockSpec((B, TN), lambda j, off: (0, j)),
        ),
        compiler_params=cparams,
    )(jnp.asarray(off_q), x_band)
    shifted = shifted[:, :out_len]

    # crop / zero-pad to the original length (matches torchaudio PitchShift)
    if out_len >= L:
        shifted = shifted[:, :L]
    else:
        shifted = jnp.pad(shifted, ((0, 0), (0, L - out_len)))
    return shifted


if __name__ == "__main__":
    key = jax.random.PRNGKey(0)
    waveform = jax.random.normal(key, (2, 2048), dtype=jnp.float32)  # (batch, time)
    out = random_pitch(waveform, sample_rate=16000, n_steps_range=(-2.0, 2.0), seed=0)
    out = jax.block_until_ready(out)
    assert out.shape == waveform.shape and out.dtype == jnp.float32
    assert bool(jnp.all(jnp.isfinite(out)))
    print("KERNEL_OK")
</pallas_src>

<mosaic_0001>
module attributes {stable_mosaic.version = 11 : i64} {
  func.func @_stft_kernel(%arg0: i32, %arg1: memref<32x512xbf16, #tpu.memory_space<vmem>>, %arg2: memref<512x768xbf16, #tpu.memory_space<vmem>>, %arg3: memref<32x768xf32, #tpu.memory_space<vmem>>) attributes {dimension_semantics = [#tpu.dimension_semantics<parallel>], iteration_bounds = array<i64: 2>, scalar_prefetch = 0 : i64, scratch_operands = 0 : i64, tpu.core_type = #tpu.core_type<tc>, window_params = [{transform_indices = @transform_0, window_bounds = array<i64: 32, 512>}, {pipeline_mode = #tpu.pipeline_mode<synchronous>, transform_indices = @transform_1, window_bounds = array<i64: 512, 768>}, {transform_indices = @transform_2, window_bounds = array<i64: 32, 768>}]} {
    %c0 = arith.constant 0 : index
    %c0_0 = arith.constant 0 : index
    %0 = vector.load %arg1[%c0, %c0_0] : memref<32x512xbf16, #tpu.memory_space<vmem>>, vector<32x512xbf16>
    %c0_1 = arith.constant 0 : index
    %c0_2 = arith.constant 0 : index
    %1 = vector.load %arg2[%c0_1, %c0_2] : memref<512x768xbf16, #tpu.memory_space<vmem>>, vector<512x768xbf16>
    %cst = arith.constant dense<0.000000e+00> : vector<32x768xf32>
    %2 = tpu.matmul %0, %1, %cst {dimension_numbers = #tpu.dot_dimension_numbers<[1], [0], [0], [1], [0, 0, 1, 1], [], []>} : vector<32x512xbf16>, vector<512x768xbf16>, vector<32x768xf32> -> vector<32x768xf32>
    %c0_3 = arith.constant 0 : index
    %c0_4 = arith.constant 0 : index
    %3 = vector.load %arg3[%c0_3, %c0_4] : memref<32x768xf32, #tpu.memory_space<vmem>>, vector<32x768xf32>
    tpu.vector_store %arg3[%c0_3, %c0_4], %2 {strides = array<i32>} : memref<32x768xf32, #tpu.memory_space<vmem>>, vector<32x768xf32>,
    return
  }
  func.func @transform_0(%arg0: i32) -> (i32, i32) {
    %c0_i32 = arith.constant 0 : i32
    %c0_i32_0 = arith.constant 0 : i32
    return %arg0, %c0_i32 : i32, i32
  }
  func.func @transform_1(%arg0: i32) -> (i32, i32) {
    %c0_i32 = arith.constant 0 : i32
    %c0_i32_0 = arith.constant 0 : i32
    %c0_i32_1 = arith.constant 0 : i32
    return %c0_i32, %c0_i32_0 : i32, i32
  }
  func.func @transform_2(%arg0: i32) -> (i32, i32) {
    %c0_i32 = arith.constant 0 : i32
    %c0_i32_0 = arith.constant 0 : i32
    return %arg0, %c0_i32 : i32, i32
  }
}

</mosaic_0001>

<bundles_post_ra>
// kernel: tpu_custom_call.1
= control target key start
LH: loop header
LB: loop body
LE: loop exit
PB: predicated region body
PF: predicated region fallthrough
CT: control target
= control target key end

     0   :  { %7 = vsyncpa [#allocation3], 0  ;;  %s2860_s0 = inlined_call_operand.hbm [shape: bf16[64,512], index: 0, kind: input, shape index: {}]   ;;  %s2861_s1 = inlined_call_operand.hbm [shape: bf16[512,768], index: 1, kind: input, shape index: {}]   ;;  %s2862_s2 = inlined_call_operand.hbm [shape: f32[64,768], index: 2, kind: output, shape index: {}]  }
   0x1   :  { %9 = vsyncpa [#allocation3 + $0x1], 0 }
   0x2   :  { %10 = vsyncpa [#allocation6], 0 }
   0x3   :  { %11 = vsyncpa [#allocation4], 0 }
   0x4   :  { %13 = vsyncpa [#allocation4 + $0x1], 0  ;;  %s2581_s9 = smov 0   ;;  %s2583_s10 = smov 0  }
   0x5   :  { %s2585_s11 = smov 0   ;;  %s2587_s12 = smov 0  }
   0x6 LB: > { %s2602_s13 = sadd.s32 4294967295, %s2555_s12   ;;  %s1820_s14 = sadd.s32 4294967294, %s2555_s12   ;;  %s2555_s12 = sphi %s2587_s12, %s2882_s12   ;;  %s2551_s11 = sphi %s2585_s11, %s2881_s11   ;;  %s2547_s10 = sphi %s2583_s10, %s2880_s10   ;;  %s2543_s9 = sphi %s2581_s9, %s2879_s9  }
   0x7   : > { %p39_p0 = scmp.ne.s32.totalorder %s2547_s10, %s2543_s9  ;;  %p2863_p1 = scmp.eq.s32.totalorder %s2602_s13, 0 }
   0x8   : > { %p90_p3 = scmp.eq.s32.totalorder %s1820_s14, 1  ;;  %p1821_p5 = scmp.ge.s32.totalorder %s2555_s12, 1 }
   0x9   : > { %p2611_p4 = por %p2863_p1, %p39_p0  ;;  %p97_p7 = scmp.lt.s32.totalorder %s2555_s12, 3 }
   0xa   : > { %p2616_p6 = por %p90_p3, %p39_p0  ;;  %s2557_s18 = smov [#allocation5]  }
   0xb   : > { %s2866_s15 = scalar_select %p2611_p4, 1, 0 }
   0xc   : > { %s2867_s16 = scalar_select %p2616_p6, 1, 0 }
   0xd   : > { %p2621_p8 = pnand %p1821_p5, %p97_p7  ;;  %s109_s19 = sshll.u32 %s2557_s18, 4  ;;  %s2625_s19 = int_to_ptr.vmem [resolvable:$true] %s109_s19 }
   0xe   : > { %s2637_s21 = sadd.s32 1, %s2555_s12   ;;  %s26_s22 = sadd.s32 1, %s2551_s11 }
   0xf   : > { %s2868_s17 = scalar_select %p2621_p8, 1, 0 }
  0x10   : > { %p2072_p9 = pneg %p2621_p8  ;;  %s23_s23 = ssub.s32 %s2555_s12, %s2637_s21 }
  0x11   : > { %s2427_s26 = scalar_lea.hbm %s2861_s1, 24576 }
  0x12   : > { %p2632_p11 = pnand %p2072_p9, %p2863_p1  ;;  %p2428_p12 = scmp.ne.s32.totalorder %s2861_s1, %s2427_s26 }
  0x13   : > { %p2434_p5 = scmp.lt.u32.totalorder %s2427_s26, %s2861_s1 }
  0x14   : > { %p2429_p13 = pneg %p2632_p11 }
  0x16   : > { %p2430_p0 = pnand %p2429_p13, %p2428_p12 }
  0x18   : > { %p2431_p3 = pneg %p2430_p0 }
  0x1a   : > { %p2436_p7 = pnand %p2434_p5, %p2431_p3 }
  0x1c   : > { %2439 = shalt.err (!%p2436_p7)
}
  0x1d   : > { %s2440_s3 = scalar_lea.vmem %s2625_s19, 24576  ;;  %p2448_p2 = scmp.lt.s32.totalorder %s2625_s19, %s2625_s19 }
  0x1e   : > { %p2441_p9 = scmp.ne.s32.totalorder %s2625_s19, %s2440_s3  ;;  %p2449_p6 = scmp.lt.s32.totalorder %s2440_s3, %s2440_s3 }
  0x20   : > { %p2443_p10 = pnand %p2441_p9, %p2429_p13  ;;  %p2450_p4 = por %p2449_p6, %p2448_p2 }
  0x22   : > { %p2444_p1 = pneg %p2443_p10 }
  0x24   : > { %p2451_p8 = pnand %p2450_p4, %p2444_p1 }
  0x26   : > { %2454 = shalt.err (!%p2451_p8)
}
  0x27   : > { %s2558_s4 = smov 384   ;;  %s2559_s5 = smov 24  }
  0x28   : > { %2075 = dma.hbm_to_vmem [thread:$0]  (!%p2632_p11), %s2861_s1, 24576, %s2625_s19, [#allocation6], %s2558_s4, %s2558_s4, %s2559_s5  }
  0x29   : > { %p24_p2 = scmp.eq.s32.totalorder %s23_s23, 0  ;;  %p33_p1 = scmp.ne.s32.totalorder %s2551_s11, %s2547_s10 }
  0x2a   : > { %p34_p4 = scmp.eq.s32.totalorder %s2555_s12, 0  ;;  %p2085_p6 = scmp.lt.s32.totalorder %s2555_s12, 2 }
  0x2b   : > { %s2668_s8 = scalar_select %p24_p2, %s2551_s11, %s26_s22  }
  0x2c   : > { %p35_p8 = por %p34_p4, %p33_p1  ;;  %p2870_p10 = scmp.eq.s32.totalorder %s2602_s13, 1 }
  0x2d   : > { %s123_s18 = sand.u32 1, %s2551_s11   ;;  %s2037_s24 = sshll.u32 %s2555_s12, 10 }
  0x2e   : > { %p2672_p12 = por %p2870_p10, %p33_p1  ;;  %s1824_s25 = sshll.u32 %s123_s18, 6 }
  0x2f   : > { %s2681_s27 = scalar_lea.hbm %s2860_s0, %s2037_s24  ;;  %s127_s19 = scalar_lea.vmem [#allocation2], %s1824_s25 }
  0x30   : > { %s135_s22 = sshll.u32 %s127_s19, 4  ;;  %p2683_p11 = pnand %p2085_p6, %p35_p8  ;;  %s2687_s22 = int_to_ptr.vmem [resolvable:$true] %s135_s22 }
  0x31   : > { %s2689_s28 = scalar_lea.sflag [#allocation3], %s123_s18  ;;  %s2455_s29 = scalar_lea.hbm %s2681_s27, 1024 }
  0x32   : > { %p2456_p13 = scmp.ne.s32.totalorder %s2681_s27, %s2455_s29  ;;  %p2457_p0 = pneg %p2683_p11 }
  0x33   : > { %s2460_s4 = scalar_lea.hbm %s2860_s0, 2048  ;;  %p2461_p7 = scmp.lt.u32.totalorder %s2681_s27, %s2860_s0 }
  0x34   : > { %p2458_p3 = pnand %p2457_p0, %p2456_p13  ;;  %p2462_p9 = scmp.lt.u32.totalorder %s2460_s4, %s2455_s29 }
  0x35   : > { %p2464_p1 = scmp.lt.u32.totalorder %s2455_s29, %s2681_s27 }
  0x36   : > { %p2459_p5 = pneg %p2458_p3  ;;  %p2463_p2 = por %p2462_p9, %p2461_p7 }
  0x38   : > { %p2465_p4 = por %p2464_p1, %p2463_p2 }
  0x3a   : > { %p2466_p6 = pnand %p2465_p4, %p2459_p5 }
  0x3c   : > { %2469 = shalt.err (!%p2466_p6)
}
  0x3d   : > { %s2470_s7 = scalar_lea.vmem %s2687_s22, 1024  ;;  %s2560_s18 = smov [#allocation2]  }
  0x3e   : > { %p2471_p8 = scmp.ne.s32.totalorder %s2687_s22, %s2470_s7  ;;  %s2475_s24 = sshll.u32 %s2560_s18, 4  ;;  %s2476_s24 = int_to_ptr.vmem [resolvable:$false] %s2475_s24 }
  0x3f   : > { %s2477_s25 = scalar_lea.vmem %s2476_s24, 2048  ;;  %p2478_p3 = scmp.lt.s32.totalorder %s2687_s22, %s2476_s24 }
  0x40   : > { %p2473_p10 = pnand %p2471_p8, %p2457_p0  ;;  %p2479_p7 = scmp.lt.s32.totalorder %s2477_s25, %s2470_s7 }
  0x42   : > { %p2474_p13 = pneg %p2473_p10  ;;  %p2480_p9 = por %p2479_p7, %p2478_p3 }
  0x44   : > { %p2481_p2 = pnand %p2480_p9, %p2474_p13 }
  0x46   : > { %2484 = shalt.err (!%p2481_p2)
}
  0x47   : > { %s2561_s20 = smov 256   ;;  %s2562_s26 = smov 16  }
  0x48   : > { %2079 = dma.hbm_to_vmem [thread:$0]  (!%p2683_p11), %s2681_s27, 1024, %s2687_s22, %s2689_s28, %s2561_s20, %s2561_s20, %s2562_s26  }
  0x49   : > { %p2873_p0 = scmp.ne.s32.totalorder %s2868_s17, 0 }
  0x4a   : > { %s2720_s19 = sand.u32 (!%p2873_p0), 1, %s2547_s10   ;;  %p2874_p5 = scmp.ne.s32.totalorder (!%p2873_p0), %s2866_s15, 0 }
  0x4b   : > { %147 = sbr.rel (%p2873_p0) target bundleno = 518 (0x206), region = 28  ;;  %s1829_s29 = sshll.u32 (!%p2873_p0), %s2720_s19, 6 }
  0x4c   : > { %s150_s30 = scalar_lea.sflag (!%p2873_p0), [#allocation3], %s2720_s19  ;;  %s2724_s3 = scalar_lea.vmem (!%p2873_p0), [#allocation2], %s1829_s29 }
  0x52   : > { %2530 = dma.done.wait (%p2874_p5), %s150_s30, 1024  }
  0x53   : > { %2532 = vsyncadd (%p2874_p5), %s150_s30, 4294966272  ;;  %p2875_p11 = scmp.eq.s32.totalorder %s2602_s13, 0 }
  0x55   : > { %2534 = dma.done.wait (%p2875_p11), [#allocation6], 24576   ;;  %p2876_p1 = pmov %p2875_p11 }
  0x56   : > { %v2127_v0 = vld [vmem:[#allocation5 + $0x4] ss:$24 sps:$4 sm:$0xff]   ;;  %v2131_v2 = vld [vmem:[#allocation5] ss:$24 sps:$4 sm:$0xff]   ;;  %v2133_v4 = vld [vmem:[#allocation5 + $0x34] ss:$24 sps:$4 sm:$0xff]  }
  0x57   : > { %2536 = vsyncadd (%p2876_p1), [#allocation6], 4294942720  ;;  %v2129_v1 = vld [vmem:[#allocation5 + $0x304] ss:$24 sps:$4 sm:$0xff]   ;;  %1380 = vmatprep.subr.bf16.mxu1 %v2127_v0  ;;  %v2132_v3 = vld [vmem:[#allocation5 + $0x300] ss:$24 sps:$4 sm:$0xff]  }
  0x58   : > { %1433 = vmatprep.subr.bf16.mxu0 %v2129_v1  ;;  %1381 = vmatpush1.bf16.msra.mxu1 %v2131_v2  ;;  %v2135_v5 = vld [vmem:[#allocation5 + $0x334] ss:$24 sps:$4 sm:$0xff]   ;;  %v2137_v6 = vld [vmem:[#allocation5 + $0x30] ss:$24 sps:$4 sm:$0xff]   ;;  %v2139_v8 = vld [vmem:[#allocation5 + $0x64] ss:$24 sps:$4 sm:$0xff]  }
  0x59   : > { %1434 = vmatpush1.bf16.msra.mxu0 %v2132_v3  ;;  %1382 = vmatprep.subr.bf16.mxu1 %v2133_v4  ;;  %v2138_v7 = vld [vmem:[#allocation5 + $0x330] ss:$24 sps:$4 sm:$0xff]   ;;  %v2141_v9 = vld [vmem:[#allocation5 + $0x364] ss:$24 sps:$4 sm:$0xff]   ;;  %v2143_v10 = vld [vmem:[#allocation5 + $0x60] ss:$24 sps:$4 sm:$0xff]  }
  0x5a   : > { %1435 = vmatprep.subr.bf16.mxu0 %v2135_v5  ;;  %v2144_v11 = vld [vmem:[#allocation5 + $0x360] ss:$24 sps:$4 sm:$0xff]   ;;  %v2145_v12 = vld [vmem:[#allocation5 + $0x94] ss:$24 sps:$4 sm:$0xff]   ;;  %v2149_v14 = vld [vmem:[#allocation5 + $0x90] ss:$24 sps:$4 sm:$0xff]  }
  0x5b   : > { %v2147_v13 = vld [vmem:[#allocation5 + $0x394] ss:$24 sps:$4 sm:$0xff]   ;;  %v2150_v15 = vld [vmem:[#allocation5 + $0x390] ss:$24 sps:$4 sm:$0xff]   ;;  %v2151_v16 = vld [vmem:[#allocation5 + $0xc4] ss:$24 sps:$4 sm:$0xff]  }
  0x5c   : > { %1383 = vmatpush1.bf16.msra.mxu1 %v2137_v6  ;;  %v2153_v17 = vld [vmem:[#allocation5 + $0x3c4] ss:$24 sps:$4 sm:$0xff]   ;;  %v2155_v18 = vld [vmem:[#allocation5 + $0xc0] ss:$24 sps:$4 sm:$0xff]   ;;  %v2157_v20 = vld [vmem:[#allocation5 + $0xf4] ss:$24 sps:$4 sm:$0xff]  }
  0x5d   : > { %1436 = vmatpush1.bf16.msra.mxu0 %v2138_v7  ;;  %1384 = vmatprep.subr.bf16.mxu1 %v2139_v8  ;;  %v2156_v19 = vld [vmem:[#allocation5 + $0x3c0] ss:$24 sps:$4 sm:$0xff]   ;;  %v2159_v21 = vld [vmem:[#allocation5 + $0x3f4] ss:$24 sps:$4 sm:$0xff]   ;;  %v2161_v22 = vld [vmem:[#allocation5 + $0xf0] ss:$24 sps:$4 sm:$0xff]  }
  0x5e   : > { %1437 = vmatprep.subr.bf16.mxu0 %v2141_v9  ;;  %v2162_v23 = vld [vmem:[#allocation5 + $0x3f0] ss:$24 sps:$4 sm:$0xff]   ;;  %v2163_v24 = vld [vmem:[#allocation5 + $0x124] ss:$24 sps:$4 sm:$0xff]   ;;  %v2167_v26 = vld [vmem:[#allocation5 + $0x120] ss:$24 sps:$4 sm:$0xff]  }
  0x5f   : > { %v2165_v25 = vld [vmem:[#allocation5 + $0x424] ss:$24 sps:$4 sm:$0xff]   ;;  %v2168_v27 = vld [vmem:[#allocation5 + $0x420] ss:$24 sps:$4 sm:$0xff]   ;;  %v2169_v28 = vld [vmem:[#allocation5 + $0x154] ss:$24 sps:$4 sm:$0xff]  }
  0x60   : > { %1385 = vmatpush1.bf16.msra.mxu1 %v2143_v10  ;;  %v2171_v29 = vld [vmem:[#allocation5 + $0x454] ss:$24 sps:$4 sm:$0xff]   ;;  %v2173_v30 = vld [vmem:[#allocation5 + $0x150] ss:$24 sps:$4 sm:$0xff]   ;;  %v2175_v32 = vld [vmem:[#allocation5 + $0x184] ss:$24 sps:$4 sm:$0xff]  }
  0x61   : > { %1438 = vmatpush1.bf16.msra.mxu0 %v2144_v11  ;;  %1386 = vmatprep.subr.bf16.mxu1 %v2145_v12  ;;  %v2174_v31 = vld [vmem:[#allocation5 + $0x450] ss:$24 sps:$4 sm:$0xff]   ;;  %v2177_v33 = vld [vmem:[#allocation5 + $0x484] ss:$24 sps:$4 sm:$0xff]   ;;  %v2179_v34 = vld [vmem:[#allocation5 + $0x180] ss:$24 sps:$4 sm:$0xff]  }
  0x62   : > { %1439 = vmatprep.subr.bf16.mxu0 %v2147_v13  ;;  %v2180_v35 = vld [vmem:[#allocation5 + $0x480] ss:$24 sps:$4 sm:$0xff]   ;;  %v2181_v36 = vld [vmem:[#allocation5 + $0x1b4] ss:$24 sps:$4 sm:$0xff]   ;;  %v2185_v38 = vld [vmem:[#allocation5 + $0x1b0] ss:$24 sps:$4 sm:$0xff]  }
  0x63   : > { %v2183_v37 = vld [vmem:[#allocation5 + $0x4b4] ss:$24 sps:$4 sm:$0xff]   ;;  %v2186_v39 = vld [vmem:[#allocation5 + $0x4b0] ss:$24 sps:$4 sm:$0xff]   ;;  %v2187_v40 = vld [vmem:[#allocation5 + $0x1e4] ss:$24 sps:$4 sm:$0xff]  }
  0x64   : > { %1387 = vmatpush1.bf16.msra.mxu1 %v2149_v14  ;;  %v2189_v41 = vld [vmem:[#allocation5 + $0x4e4] ss:$24 sps:$4 sm:$0xff]   ;;  %v2191_v42 = vld [vmem:[#allocation5 + $0x1e0] ss:$24 sps:$4 sm:$0xff]   ;;  %v2193_v44 = vld [vmem:[#allocation5 + $0x214] ss:$24 sps:$4 sm:$0xff]  }
  0x65   : > { %1440 = vmatpush1.bf16.msra.mxu0 %v2150_v15  ;;  %1388 = vmatprep.subr.bf16.mxu1 %v2151_v16  ;;  %v2192_v43 = vld [vmem:[#allocation5 + $0x4e0] ss:$24 sps:$4 sm:$0xff]   ;;  %v2195_v45 = vld [vmem:[#allocation5 + $0x514] ss:$24 sps:$4 sm:$0xff]   ;;  %v2197_v46 = vld [vmem:[#allocation5 + $0x210] ss:$24 sps:$4 sm:$0xff]  }
  0x66   : > { %1441 = vmatprep.subr.bf16.mxu0 %v2153_v17  ;;  %v2198_v47 = vld [vmem:[#allocation5 + $0x510] ss:$24 sps:$4 sm:$0xff]   ;;  %v2735_v48 = vld [vmem:[%s2724_s3 + $0x4] ss:$16 sps:$4 sm:$0xff]   ;;  %v2738_v50 = vld [vmem:[%s2724_s3 + $0xc] ss:$16 sps:$4 sm:$0xff]  }
  0x67   : > { %v2199_v49 = vld [vmem:[#allocation5 + $0x244] ss:$24 sps:$4 sm:$0xff]   ;;  %1412 = vmatprep.mubr.bf16.mxu1 %v2735_v48  ;;  %1465 = vmatprep.mubr.bf16.mxu0 %v2738_v50  ;;  %v2203_v52 = vld [vmem:[#allocation5 + $0x240] ss:$24 sps:$4 sm:$0xff]   ;;  %v2205_v54 = vld [vmem:[#allocation5 + $0x274] ss:$24 sps:$4 sm:$0xff]  }
  0x68   : > { %1389 = vmatpush1.bf16.msra.mxu1 %v2155_v18  ;;  %v2201_v51 = vld [vmem:[#allocation5 + $0x544] ss:$24 sps:$4 sm:$0xff]   ;;  %v2204_v53 = vld [vmem:[#allocation5 + $0x540] ss:$24 sps:$4 sm:$0xff]   ;;  %v2207_v55 = vld [vmem:[#allocation5 + $0x574] ss:$24 sps:$4 sm:$0xff]  }
  0x69   : > { %1442 = vmatpush1.bf16.msra.mxu0 %v2156_v19  ;;  %1390 = vmatprep.subr.bf16.mxu1 %v2157_v20  ;;  %v2209_v56 = vld [vmem:[#allocation5 + $0x270] ss:$24 sps:$4 sm:$0xff]   ;;  %v2211_v58 = vld [vmem:[#allocation5 + $0x2a4] ss:$24 sps:$4 sm:$0xff]   ;;  %v2215_v60 = vld [vmem:[#allocation5 + $0x2a0] ss:$24 sps:$4 sm:$0xff]  }
  0x6a   : > { %1443 = vmatprep.subr.bf16.mxu0 %v2159_v21  ;;  %v2210_v57 = vld [vmem:[#allocation5 + $0x570] ss:$24 sps:$4 sm:$0xff]   ;;  %v2213_v59 = vld [vmem:[#allocation5 + $0x5a4] ss:$24 sps:$4 sm:$0xff]   ;;  %v2216_v61 = vld [vmem:[#allocation5 + $0x5a0] ss:$24 sps:$4 sm:$0xff]  }
  0x6b   : > { %v2217_v62 = vld [vmem:[#allocation5 + $0x2d4] ss:$24 sps:$4 sm:$0xff]   ;;  %v2221_v0 = vld [vmem:[#allocation5 + $0x2d0] ss:$24 sps:$4 sm:$0xff]   ;;  %v2240_v9 = vld [vmem:[#allocation5 + $0x44] ss:$24 sps:$4 sm:$0xff]  }
  0x6c   : > { %1391 = vmatpush1.bf16.msra.mxu1 %v2161_v22  ;;  %v2219_v63 = vld [vmem:[#allocation5 + $0x5d4] ss:$24 sps:$4 sm:$0xff]   ;;  %v2222_v1 = vld [vmem:[#allocation5 + $0x5d0] ss:$24 sps:$4 sm:$0xff]   ;;  %v2238_v11 = vld [vmem:[#allocation5 + $0x40] ss:$24 sps:$4 sm:$0xff]  }
  0x6d   : > { %1444 = vmatpush1.bf16.msra.mxu0 %v2162_v23  ;;  %1392 = vmatprep.subr.bf16.mxu1 %v2163_v24  ;;  %v2231_v2 = vld [vmem:[#allocation5 + $0xc] ss:$24 sps:$4 sm:$0xff]   ;;  %v2743_v4 = vld [vmem:[%s2724_s3] ss:$16 sps:$4 sm:$0xff]   ;;  %v2746_v5 = vld [vmem:[%s2724_s3 + $0x8] ss:$16 sps:$4 sm:$0xff]  }
  0x6e   : > { %1445 = vmatprep.subr.bf16.mxu0 %v2165_v25  ;;  %v2234_v3 = vld [vmem:[#allocation5 + $0x14] ss:$24 sps:$4 sm:$0xff]   ;;  %v2229_v6 = vld [vmem:[#allocation5 + $0x8] ss:$24 sps:$4 sm:$0xff]   ;;  %v2235_v10 = vld [vmem:[#allocation5 + $0x38] ss:$24 sps:$4 sm:$0xff]  }
  0x6f   : > { %v2232_v7 = vld [vmem:[#allocation5 + $0x10] ss:$24 sps:$4 sm:$0xff]   ;;  %v2237_v8 = vld [vmem:[#allocation5 + $0x3c] ss:$24 sps:$4 sm:$0xff]   ;;  %v2243_v12 = vld [vmem:[#allocation5 + $0x6c] ss:$24 sps:$4 sm:$0xff]  }
  0x70   : > { %1393 = vmatpush1.bf16.msra.mxu1 %v2167_v26  ;;  %v2246_v13 = vld [vmem:[#allocation5 + $0x74] ss:$24 sps:$4 sm:$0xff]   ;;  %v2241_v14 = vld [vmem:[#allocation5 + $0x68] ss:$24 sps:$4 sm:$0xff]   ;;  %v2252_v17 = vld [vmem:[#allocation5 + $0xa4] ss:$24 sps:$4 sm:$0xff]  }
  0x71   : > { %1446 = vmatpush1.bf16.msra.mxu0 %v2168_v27  ;;  %1394 = vmatprep.subr.bf16.mxu1 %v2169_v28  ;;  %v2244_v15 = vld [vmem:[#allocation5 + $0x70] ss:$24 sps:$4 sm:$0xff]   ;;  %v2249_v16 = vld [vmem:[#allocation5 + $0x9c] ss:$24 sps:$4 sm:$0xff]   ;;  %v2250_v19 = vld [vmem:[#allocation5 + $0xa0] ss:$24 sps:$4 sm:$0xff]  }
  0x72   : > { %1447 = vmatprep.subr.bf16.mxu0 %v2171_v29  ;;  %v2247_v18 = vld [vmem:[#allocation5 + $0x98] ss:$24 sps:$4 sm:$0xff]   ;;  %v2255_v20 = vld [vmem:[#allocation5 + $0xcc] ss:$24 sps:$4 sm:$0xff]   ;;  %v2253_v22 = vld [vmem:[#allocation5 + $0xc8] ss:$24 sps:$4 sm:$0xff]  }
  0x73   : > { %v2258_v21 = vld [vmem:[#allocation5 + $0xd4] ss:$24 sps:$4 sm:$0xff]   ;;  %v2256_v23 = vld [vmem:[#allocation5 + $0xd0] ss:$24 sps:$4 sm:$0xff]   ;;  %v2264_v25 = vld [vmem:[#allocation5 + $0x104] ss:$24 sps:$4 sm:$0xff]  }
  0x74   : > { %1395 = vmatpush1.bf16.msra.mxu1 %v2173_v30  ;;  %v2261_v24 = vld [vmem:[#allocation5 + $0xfc] ss:$24 sps:$4 sm:$0xff]   ;;  %v2259_v26 = vld [vmem:[#allocation5 + $0xf8] ss:$24 sps:$4 sm:$0xff]   ;;  %v2267_v28 = vld [vmem:[#allocation5 + $0x12c] ss:$24 sps:$4 sm:$0xff]  }
  0x75   : > { %1448 = vmatpush1.bf16.msra.mxu0 %v2174_v31  ;;  %1396 = vmatprep.subr.bf16.mxu1 %v2175_v32  ;;  %v2262_v27 = vld [vmem:[#allocation5 + $0x100] ss:$24 sps:$4 sm:$0xff]   ;;  %v2270_v29 = vld [vmem:[#allocation5 + $0x134] ss:$24 sps:$4 sm:$0xff]   ;;  %s2062_s15 = smul.u32 192, %s2720_s19  ;;  %s2563_s6 = smov [#allocation7]  }
  0x76   : > { %1449 = vmatprep.subr.bf16.mxu0 %v2177_v33  ;;  %v2751_v30 = vld [vmem:[%s2724_s3 + $0x24] ss:$16 sps:$4 sm:$0xff]   ;;  %v2754_v31 = vld [vmem:[%s2724_s3 + $0x2c] ss:$16 sps:$4 sm:$0xff]   ;;  %v2757_v32 = vld [vmem:[%s2724_s3 + $0x20] ss:$16 sps:$4 sm:$0xff]  }
  0x77   : > { %v2760_v33 = vld [vmem:[%s2724_s3 + $0x28] ss:$16 sps:$4 sm:$0xff]   ;;  %s2783_s17 = scalar_lea.vmem [#allocation7], %s2062_s15  ;;  %s2063_s27 = smul.u32 3072, %s2602_s13 }
  0x78   : > { %1397 = vmatpush1.bf16.msra.mxu1 %v2179_v34  ;;  %v2265_v34 = vld [vmem:[#allocation5 + $0x128] ss:$24 sps:$4 sm:$0xff]   ;;  %s1737_s22 = sshll.u32 %s2783_s17, 4  ;;  %s1723_s13 = scalar_lea.sflag [#allocation4], %s2720_s19  ;;  %s2810_s22 = int_to_ptr.vmem [resolvable:$true] %s1737_s22 }
  0x79   : > { %1450 = vmatpush1.bf16.msra.mxu0 %v2180_v35  ;;  %1398 = vmatprep.subr.bf16.mxu1 %v2181_v36  ;;  %v2268_v35 = vld [vmem:[#allocation5 + $0x130] ss:$24 sps:$4 sm:$0xff]   ;;  %v2273_v36 = vld [vmem:[#allocation5 + $0x15c] ss:$24 sps:$4 sm:$0xff]   ;;  %s2808_s4 = scalar_lea.hbm %s2862_s2, %s2063_s27  ;;  %s2485_s5 = scalar_lea.vmem %s2810_s22, 3072 }
  0x7a   : > { %1451 = vmatprep.subr.bf16.mxu0 %v2183_v37  ;;  %v2276_v37 = vld [vmem:[#allocation5 + $0x164] ss:$24 sps:$4 sm:$0xff]   ;;  %p2486_p4 = scmp.ne.s32.totalorder %s2810_s22, %s2485_s5  ;;  %s2489_s7 = sshll.u32 %s2563_s6, 4  ;;  %s2490_s7 = int_to_ptr.vmem [resolvable:$false] %s2489_s7 }
  0x7b   : > { %s2491_s18 = scalar_lea.vmem %s2490_s7, 6144  ;;  %p2492_p10 = scmp.lt.s32.totalorder %s2810_s22, %s2490_s7 }
  0x7c   : > { %1399 = vmatpush1.bf16.msra.mxu1 %v2185_v38  ;;  %v2271_v38 = vld [vmem:[#allocation5 + $0x158] ss:$24 sps:$4 sm:$0xff]   ;;  %p2487_p6 = pnand %p2486_p4, %p2672_p12  ;;  %p2493_p13 = scmp.lt.s32.totalorder %s2491_s18, %s2485_s5 }
  0x7d   : > { %1452 = vmatpush1.bf16.msra.mxu0 %v2186_v39  ;;  %1400 = vmatprep.subr.bf16.mxu1 %v2187_v40  ;;  %v2274_v39 = vld [vmem:[#allocation5 + $0x160] ss:$24 sps:$4 sm:$0xff]   ;;  %v2279_v40 = vld [vmem:[#allocation5 + $0x18c] ss:$24 sps:$4 sm:$0xff]  }
  0x7e   : > { %1453 = vmatprep.subr.bf16.mxu0 %v2189_v41  ;;  %v2282_v41 = vld [vmem:[#allocation5 + $0x194] ss:$24 sps:$4 sm:$0xff]   ;;  %p2488_p8 = pneg %p2487_p6  ;;  %p2494_p3 = por %p2493_p13, %p2492_p10 }
  0x80   : > { %1401 = vmatpush1.bf16.msra.mxu1 %v2191_v42  ;;  %v2277_v42 = vld [vmem:[#allocation5 + $0x188] ss:$24 sps:$4 sm:$0xff]   ;;  %p2495_p7 = pnand %p2494_p3, %p2488_p8 }
  0x81   : > { %1454 = vmatpush1.bf16.msra.mxu0 %v2192_v43  ;;  %1402 = vmatprep.subr.bf16.mxu1 %v2193_v44  ;;  %v2280_v43 = vld [vmem:[#allocation5 + $0x190] ss:$24 sps:$4 sm:$0xff]   ;;  %v2285_v44 = vld [vmem:[#allocation5 + $0x1bc] ss:$24 sps:$4 sm:$0xff]  }
  0x82   : > { %1455 = vmatprep.subr.bf16.mxu0 %v2195_v45  ;;  %v2288_v45 = vld [vmem:[#allocation5 + $0x1c4] ss:$24 sps:$4 sm:$0xff]  }
  0x84   : > { %1403 = vmatpush1.bf16.msra.mxu1 %v2197_v46  ;;  %v2283_v46 = vld [vmem:[#allocation5 + $0x1b8] ss:$24 sps:$4 sm:$0xff]  }
  0x85   : > { %1456 = vmatpush1.bf16.msra.mxu0 %v2198_v47  ;;  %1404 = vmatprep.subr.bf16.mxu1 %v2199_v49  ;;  %v2286_v47 = vld [vmem:[#allocation5 + $0x1c0] ss:$24 sps:$4 sm:$0xff]   ;;  %v2294_v49 = vld [vmem:[#allocation5 + $0x1f4] ss:$24 sps:$4 sm:$0xff]  }
  0x86   : > { %1457 = vmatprep.subr.bf16.mxu0 %v2201_v51  ;;  %v2289_v51 = vld [vmem:[#allocation5 + $0x1e8] ss:$24 sps:$4 sm:$0xff]  }
  0x88   : > { %1405 = vmatpush1.bf16.msra.mxu1 %v2203_v52  ;;  %v2292_v52 = vld [vmem:[#allocation5 + $0x1f0] ss:$24 sps:$4 sm:$0xff]  }
  0x89   : > { %1458 = vmatpush1.bf16.msra.mxu0 %v2204_v53  ;;  %1406 = vmatprep.subr.bf16.mxu1 %v2205_v54  ;;  %v2297_v53 = vld [vmem:[#allocation5 + $0x21c] ss:$24 sps:$4 sm:$0xff]  }
  0x8a   : > { %1459 = vmatprep.subr.bf16.mxu0 %v2207_v55  ;;  %v2300_v54 = vld [vmem:[#allocation5 + $0x224] ss:$24 sps:$4 sm:$0xff]   ;;  %v2295_v55 = vld [vmem:[#allocation5 + $0x218] ss:$24 sps:$4 sm:$0xff]  }
  0x8c   : > { %1407 = vmatpush1.bf16.msra.mxu1 %v2209_v56  ;;  %v2298_v56 = vld [vmem:[#allocation5 + $0x220] ss:$24 sps:$4 sm:$0xff]  }
  0x8d   : > { %1460 = vmatpush1.bf16.msra.mxu0 %v2210_v57  ;;  %1408 = vmatprep.subr.bf16.mxu1 %v2211_v58  ;;  %v2303_v57 = vld [vmem:[#allocation5 + $0x24c] ss:$24 sps:$4 sm:$0xff]  }
  0x8e   : > { %1461 = vmatprep.subr.bf16.mxu0 %v2213_v59  ;;  %v2306_v58 = vld [vmem:[#allocation5 + $0x254] ss:$24 sps:$4 sm:$0xff]   ;;  %v2301_v59 = vld [vmem:[#allocation5 + $0x248] ss:$24 sps:$4 sm:$0xff]  }
  0x90   : > { %1409 = vmatpush1.bf16.msra.mxu1 %v2215_v60  ;;  %v2304_v60 = vld [vmem:[#allocation5 + $0x250] ss:$24 sps:$4 sm:$0xff]  }
  0x91   : > { %1462 = vmatpush1.bf16.msra.mxu0 %v2216_v61  ;;  %1410 = vmatprep.subr.bf16.mxu1 %v2217_v62  ;;  %v2309_v61 = vld [vmem:[#allocation5 + $0x27c] ss:$24 sps:$4 sm:$0xff]  }
  0x92   : > { %1463 = vmatprep.subr.bf16.mxu0 %v2219_v63  ;;  %v2312_v62 = vld [vmem:[#allocation5 + $0x284] ss:$24 sps:$4 sm:$0xff]   ;;  %v2307_v63 = vld [vmem:[#allocation5 + $0x278] ss:$24 sps:$4 sm:$0xff]  }
  0x94   : > { %1411 = vmatpush1.bf16.msra.mxu1 %v2221_v0  ;;  %v2310_v0 = vld [vmem:[#allocation5 + $0x280] ss:$24 sps:$4 sm:$0xff]  }
  0x95   : > { %1464 = vmatpush1.bf16.msra.mxu0 %v2222_v1  ;;  %1486 = vmatprep.subr.bf16.mxu1 %v2231_v2  ;;  %v2321_v1 = vld [vmem:[#allocation5 + $0x2ac] ss:$24 sps:$4 sm:$0xff]  }
  0x96   : > { %1592 = vmatprep.subr.bf16.mxu0 %v2234_v3  ;;  %v2324_v2 = vld [vmem:[#allocation5 + $0x2b4] ss:$24 sps:$4 sm:$0xff]   ;;  %v2319_v3 = vld [vmem:[#allocation5 + $0x2a8] ss:$24 sps:$4 sm:$0xff]  }
  0x97   : > { %1413 = vmatmul.mubr.bf16.vlgmr.msra.gmra.mrb[0].mxu1 %v2743_v4 }
  0x98   : > { %1466 = vmatmul.mubr.bf16.vlgmr.msra.gmra.mrb[0].mxu0 %v2746_v5  ;;  %1487 = vmatpush1.bf16.msra.mxu1 %v2229_v6  ;;  %v2322_v6 = vld [vmem:[#allocation5 + $0x2b0] ss:$24 sps:$4 sm:$0xff]  }
  0x99   : > { %1593 = vmatpush1.bf16.msra.mxu0 %v2232_v7  ;;  %1488 = vmatprep.subr.bf16.mxu1 %v2237_v8  ;;  %v2327_v7 = vld [vmem:[#allocation5 + $0x2dc] ss:$24 sps:$4 sm:$0xff]  }
  0x9a   : > { %1594 = vmatprep.subr.bf16.mxu0 %v2240_v9  ;;  %1422 = vmatprep.mubr.bf16.mxu1 %v2751_v30  ;;  %v2330_v8 = vld [vmem:[#allocation5 + $0x2e4] ss:$24 sps:$4 sm:$0xff]   ;;  %v2325_v9 = vld [vmem:[#allocation5 + $0x2d8] ss:$24 sps:$4 sm:$0xff]  }
  0x9b   : > { %1475 = vmatprep.mubr.bf16.mxu0 %v2754_v31 }
  0x9c   : > { %1489 = vmatpush1.bf16.msra.mxu1 %v2235_v10  ;;  %v2328_v10 = vld [vmem:[#allocation5 + $0x2e0] ss:$24 sps:$4 sm:$0xff]  }
  0x9d   : > { %1595 = vmatpush1.bf16.msra.mxu0 %v2238_v11  ;;  %1490 = vmatprep.subr.bf16.mxu1 %v2243_v12  ;;  %v2333_v11 = vld [vmem:[#allocation5 + $0x30c] ss:$24 sps:$4 sm:$0xff]  }
  0x9e   : > { %1596 = vmatprep.subr.bf16.mxu0 %v2246_v13  ;;  %v2336_v12 = vld [vmem:[#allocation5 + $0x314] ss:$24 sps:$4 sm:$0xff]   ;;  %v2331_v13 = vld [vmem:[#allocation5 + $0x308] ss:$24 sps:$4 sm:$0xff]  }
  0x9f   : > { %1423 = vmatmul.mubr.bf16.gmra.mrb[4].mxu1 %v2757_v32 }
  0xa0   : > { %1491 = vmatpush1.bf16.msra.mxu1 %v2241_v14  ;;  %1476 = vmatmul.mubr.bf16.gmra.mrb[4].mxu0 %v2760_v33  ;;  %v2334_v14 = vld [vmem:[#allocation5 + $0x310] ss:$24 sps:$4 sm:$0xff]  }
  0xa1   : > { %1597 = vmatpush1.bf16.msra.mxu0 %v2244_v15  ;;  %1492 = vmatprep.subr.bf16.mxu1 %v2249_v16  ;;  %v2339_v15 = vld [vmem:[#allocation5 + $0x33c] ss:$24 sps:$4 sm:$0xff]  }
  0xa2   : > { %1598 = vmatprep.subr.bf16.mxu0 %v2252_v17  ;;  %1518 = vmatprep.mubr.bf16.mxu1 %v2735_v48  ;;  %v2342_v16 = vld [vmem:[#allocation5 + $0x344] ss:$24 sps:$4 sm:$0xff]   ;;  %v2337_v17 = vld [vmem:[#allocation5 + $0x338] ss:$24 sps:$4 sm:$0xff]  }
  0xa3   : > { %1624 = vmatprep.mubr.bf16.mxu0 %v2735_v48  ;;  %v2291_v48 = vld [vmem:[#allocation5 + $0x1ec] ss:$24 sps:$4 sm:$0xff]  }
  0xa4   : > { %1493 = vmatpush1.bf16.msra.mxu1 %v2247_v18  ;;  %v2340_v18 = vld [vmem:[#allocation5 + $0x340] ss:$24 sps:$4 sm:$0xff]  }
  0xa5   : > { %1599 = vmatpush1.bf16.msra.mxu0 %v2250_v19  ;;  %1494 = vmatprep.subr.bf16.mxu1 %v2255_v20  ;;  %v2345_v19 = vld [vmem:[#allocation5 + $0x36c] ss:$24 sps:$4 sm:$0xff]  }
  0xa6   : > { %1600 = vmatprep.subr.bf16.mxu0 %v2258_v21  ;;  %v2348_v20 = vld [vmem:[#allocation5 + $0x374] ss:$24 sps:$4 sm:$0xff]   ;;  %v2343_v21 = vld [vmem:[#allocation5 + $0x368] ss:$24 sps:$4 sm:$0xff]  }
  0xa8   : > { %1495 = vmatpush1.bf16.msra.mxu1 %v2253_v22  ;;  %v2346_v22 = vld [vmem:[#allocation5 + $0x370] ss:$24 sps:$4 sm:$0xff]  }
  0xa9   : > { %1601 = vmatpush1.bf16.msra.mxu0 %v2256_v23  ;;  %1496 = vmatprep.subr.bf16.mxu1 %v2261_v24  ;;  %v2351_v23 = vld [vmem:[#allocation5 + $0x39c] ss:$24 sps:$4 sm:$0xff]   ;;  %v2349_v24 = vld [vmem:[#allocation5 + $0x398] ss:$24 sps:$4 sm:$0xff]  }
  0xaa   : > { %1602 = vmatprep.subr.bf16.mxu0 %v2264_v25  ;;  %v2352_v25 = vld [vmem:[#allocation5 + $0x3a0] ss:$24 sps:$4 sm:$0xff]  }
  0xac   : > { %1497 = vmatpush1.bf16.msra.mxu1 %v2259_v26  ;;  %v2357_v26 = vld [vmem:[#allocation5 + $0x3cc] ss:$24 sps:$4 sm:$0xff]  }
  0xad   : > { %1603 = vmatpush1.bf16.msra.mxu0 %v2262_v27  ;;  %1498 = vmatprep.subr.bf16.mxu1 %v2267_v28  ;;  %v2360_v27 = vld [vmem:[#allocation5 + $0x3d4] ss:$24 sps:$4 sm:$0xff]   ;;  %v2355_v28 = vld [vmem:[#allocation5 + $0x3c8] ss:$24 sps:$4 sm:$0xff]  }
  0xae   : > { %1604 = vmatprep.subr.bf16.mxu0 %v2270_v29  ;;  %v2358_v29 = vld [vmem:[#allocation5 + $0x3d0] ss:$24 sps:$4 sm:$0xff]  }
  0xb0   : > { %1499 = vmatpush1.bf16.msra.mxu1 %v2265_v34  ;;  %v2361_v34 = vld [vmem:[#allocation5 + $0x3f8] ss:$24 sps:$4 sm:$0xff]  }
  0xb1   : > { %1605 = vmatpush1.bf16.msra.mxu0 %v2268_v35  ;;  %1500 = vmatprep.subr.bf16.mxu1 %v2273_v36  ;;  %v2364_v35 = vld [vmem:[#allocation5 + $0x400] ss:$24 sps:$4 sm:$0xff]   ;;  %v2369_v36 = vld [vmem:[#allocation5 + $0x42c] ss:$24 sps:$4 sm:$0xff]  }
  0xb2   : > { %1606 = vmatprep.subr.bf16.mxu0 %v2276_v37  ;;  %v2372_v37 = vld [vmem:[#allocation5 + $0x434] ss:$24 sps:$4 sm:$0xff]  }
  0xb4   : > { %1501 = vmatpush1.bf16.msra.mxu1 %v2271_v38  ;;  %v2367_v38 = vld [vmem:[#allocation5 + $0x428] ss:$24 sps:$4 sm:$0xff]  }
  0xb5   : > { %1607 = vmatpush1.bf16.msra.mxu0 %v2274_v39  ;;  %1502 = vmatprep.subr.bf16.mxu1 %v2279_v40  ;;  %v2375_v39 = vld [vmem:[#allocation5 + $0x45c] ss:$24 sps:$4 sm:$0xff]  }
  0xb6   : > { %1608 = vmatprep.subr.bf16.mxu0 %v2282_v41  ;;  %v2378_v40 = vld [vmem:[#allocation5 + $0x464] ss:$24 sps:$4 sm:$0xff]   ;;  %v2373_v41 = vld [vmem:[#allocation5 + $0x458] ss:$24 sps:$4 sm:$0xff]  }
  0xb8   : > { %1503 = vmatpush1.bf16.msra.mxu1 %v2277_v42  ;;  %v2376_v42 = vld [vmem:[#allocation5 + $0x460] ss:$24 sps:$4 sm:$0xff]  }
  0xb9   : > { %1609 = vmatpush1.bf16.msra.mxu0 %v2280_v43  ;;  %1504 = vmatprep.subr.bf16.mxu1 %v2285_v44  ;;  %v2381_v43 = vld [vmem:[#allocation5 + $0x48c] ss:$24 sps:$4 sm:$0xff]  }
  0xba   : > { %1610 = vmatprep.subr.bf16.mxu0 %v2288_v45  ;;  %v2384_v44 = vld [vmem:[#allocation5 + $0x494] ss:$24 sps:$4 sm:$0xff]   ;;  %v2379_v45 = vld [vmem:[#allocation5 + $0x488] ss:$24 sps:$4 sm:$0xff]  }
  0xbc   : > { %1505 = vmatpush1.bf16.msra.mxu1 %v2283_v46  ;;  %v2382_v46 = vld [vmem:[#allocation5 + $0x490] ss:$24 sps:$4 sm:$0xff]  }
  0xbd   : > { %1611 = vmatpush1.bf16.msra.mxu0 %v2286_v47  ;;  %1506 = vmatprep.subr.bf16.mxu1 %v2291_v48  ;;  %v2387_v47 = vld [vmem:[#allocation5 + $0x4bc] ss:$24 sps:$4 sm:$0xff]  }
  0xbe   : > { %1612 = vmatprep.subr.bf16.mxu0 %v2294_v49  ;;  %v2390_v48 = vld [vmem:[#allocation5 + $0x4c4] ss:$24 sps:$4 sm:$0xff]   ;;  %v2385_v49 = vld [vmem:[#allocation5 + $0x4b8] ss:$24 sps:$4 sm:$0xff]  }
  0xc0   : > { %1507 = vmatpush1.bf16.msra.mxu1 %v2289_v51  ;;  %v2388_v51 = vld [vmem:[#allocation5 + $0x4c0] ss:$24 sps:$4 sm:$0xff]  }
  0xc1   : > { %1613 = vmatpush1.bf16.msra.mxu0 %v2292_v52  ;;  %1508 = vmatprep.subr.bf16.mxu1 %v2297_v53  ;;  %v2393_v52 = vld [vmem:[#allocation5 + $0x4ec] ss:$24 sps:$4 sm:$0xff]  }
  0xc2   : > { %1614 = vmatprep.subr.bf16.mxu0 %v2300_v54  ;;  %v2396_v53 = vld [vmem:[#allocation5 + $0x4f4] ss:$24 sps:$4 sm:$0xff]   ;;  %v2391_v54 = vld [vmem:[#allocation5 + $0x4e8] ss:$24 sps:$4 sm:$0xff]  }
  0xc4   : > { %1509 = vmatpush1.bf16.msra.mxu1 %v2295_v55  ;;  %v2394_v55 = vld [vmem:[#allocation5 + $0x4f0] ss:$24 sps:$4 sm:$0xff]  }
  0xc5   : > { %1615 = vmatpush1.bf16.msra.mxu0 %v2298_v56  ;;  %1510 = vmatprep.subr.bf16.mxu1 %v2303_v57  ;;  %v2399_v56 = vld [vmem:[#allocation5 + $0x51c] ss:$24 sps:$4 sm:$0xff]  }
  0xc6   : > { %1616 = vmatprep.subr.bf16.mxu0 %v2306_v58  ;;  %v2402_v57 = vld [vmem:[#allocation5 + $0x524] ss:$24 sps:$4 sm:$0xff]   ;;  %v2397_v58 = vld [vmem:[#allocation5 + $0x518] ss:$24 sps:$4 sm:$0xff]  }
  0xc8   : > { %1511 = vmatpush1.bf16.msra.mxu1 %v2301_v59  ;;  %v2400_v59 = vld [vmem:[#allocation5 + $0x520] ss:$24 sps:$4 sm:$0xff]  }
  0xc9   : > { %1617 = vmatpush1.bf16.msra.mxu0 %v2304_v60  ;;  %1512 = vmatprep.subr.bf16.mxu1 %v2309_v61  ;;  %v2405_v60 = vld [vmem:[#allocation5 + $0x54c] ss:$24 sps:$4 sm:$0xff]  }
  0xca   : > { %1618 = vmatprep.subr.bf16.mxu0 %v2312_v62  ;;  %v2408_v61 = vld [vmem:[#allocation5 + $0x554] ss:$24 sps:$4 sm:$0xff]   ;;  %v2403_v62 = vld [vmem:[#allocation5 + $0x548] ss:$24 sps:$4 sm:$0xff]  }
  0xcc   : > { %1513 = vmatpush1.bf16.msra.mxu1 %v2307_v63  ;;  %v2406_v63 = vld [vmem:[#allocation5 + $0x550] ss:$24 sps:$4 sm:$0xff]  }
  0xcd   : > { %1619 = vmatpush1.bf16.msra.mxu0 %v2310_v0  ;;  %1514 = vmatprep.subr.bf16.mxu1 %v2321_v1  ;;  %v2411_v0 = vld [vmem:[#allocation5 + $0x57c] ss:$24 sps:$4 sm:$0xff]  }
  0xce   : > { %1620 = vmatprep.subr.bf16.mxu0 %v2324_v2  ;;  %v2414_v1 = vld [vmem:[#allocation5 + $0x584] ss:$24 sps:$4 sm:$0xff]   ;;  %v2409_v2 = vld [vmem:[#allocation5 + $0x578] ss:$24 sps:$4 sm:$0xff]  }
  0xd0   : > { %1515 = vmatpush1.bf16.msra.mxu1 %v2319_v3  ;;  %v2412_v3 = vld [vmem:[#allocation5 + $0x580] ss:$24 sps:$4 sm:$0xff]  }
  0xd1   : > { %1621 = vmatpush1.bf16.msra.mxu0 %v2322_v6  ;;  %1516 = vmatprep.subr.bf16.mxu1 %v2327_v7  ;;  %v2417_v6 = vld [vmem:[#allocation5 + $0x5ac] ss:$24 sps:$4 sm:$0xff]  }
  0xd2   : > { %1622 = vmatprep.subr.bf16.mxu0 %v2330_v8  ;;  %v2420_v7 = vld [vmem:[#allocation5 + $0x5b4] ss:$24 sps:$4 sm:$0xff]   ;;  %v2415_v8 = vld [vmem:[#allocation5 + $0x5a8] ss:$24 sps:$4 sm:$0xff]  }
  0xd4   : > { %1517 = vmatpush1.bf16.msra.mxu1 %v2325_v9  ;;  %v2418_v9 = vld [vmem:[#allocation5 + $0x5b0] ss:$24 sps:$4 sm:$0xff]  }
  0xd5   : > { %1623 = vmatpush1.bf16.msra.mxu0 %v2328_v10  ;;  %1539 = vmatprep.subr.bf16.mxu1 %v2333_v11  ;;  %v2423_v10 = vld [vmem:[#allocation5 + $0x5dc] ss:$24 sps:$4 sm:$0xff]  }
  0xd6   : > { %1645 = vmatprep.subr.bf16.mxu0 %v2336_v12  ;;  %v2426_v11 = vld [vmem:[#allocation5 + $0x5e4] ss:$24 sps:$4 sm:$0xff]   ;;  %v2421_v12 = vld [vmem:[#allocation5 + $0x5d8] ss:$24 sps:$4 sm:$0xff]  }
  0xd7   : > { %1519 = vmatmul.mubr.bf16.vlgmr.msra.gmra.mrb[8].mxu1 %v2743_v4 }
  0xd8   : > { %1625 = vmatmul.mubr.bf16.vlgmr.msra.gmra.mrb[8].mxu0 %v2743_v4  ;;  %1540 = vmatpush1.bf16.msra.mxu1 %v2331_v13  ;;  %v2354_v4 = vld [vmem:[#allocation5 + $0x3a4] ss:$24 sps:$4 sm:$0xff]   ;;  %v2424_v13 = vld [vmem:[#allocation5 + $0x5e0] ss:$24 sps:$4 sm:$0xff]  }
  0xd9   : > { %1646 = vmatpush1.bf16.msra.mxu0 %v2334_v14  ;;  %1541 = vmatprep.subr.bf16.mxu1 %v2339_v15 }
  0xda   : > { %1647 = vmatprep.subr.bf16.mxu0 %v2342_v16  ;;  %1528 = vmatprep.mubr.bf16.mxu1 %v2751_v30 }
  0xdb   : > { %1634 = vmatprep.mubr.bf16.mxu0 %v2751_v30  ;;  %v2363_v30 = vld [vmem:[#allocation5 + $0x3fc] ss:$24 sps:$4 sm:$0xff]  }
  0xdc   : > { %1542 = vmatpush1.bf16.msra.mxu1 %v2337_v17 }
  0xdd   : > { %1648 = vmatpush1.bf16.msra.mxu0 %v2340_v18  ;;  %1543 = vmatprep.subr.bf16.mxu1 %v2345_v19 }
  0xde   : > { %1649 = vmatprep.subr.bf16.mxu0 %v2348_v20 }
  0xdf   : > { %1529 = vmatmul.mubr.bf16.gmra.mrb[12].mxu1 %v2757_v32 }
  0xe0   : > { %1635 = vmatmul.mubr.bf16.gmra.mrb[12].mxu0 %v2757_v32  ;;  %1544 = vmatpush1.bf16.msra.mxu1 %v2343_v21  ;;  %v2366_v32 = vld [vmem:[#allocation5 + $0x404] ss:$24 sps:$4 sm:$0xff]  }
  0xe1   : > { %1650 = vmatpush1.bf16.msra.mxu0 %v2346_v22  ;;  %1545 = vmatprep.subr.bf16.mxu1 %v2351_v23 }
  0xe2   : > { %1651 = vmatprep.subr.bf16.mxu0 %v2354_v4  ;;  %1571 = vmatprep.mubr.bf16.mxu1 %v2738_v50 }
  0xe3   : > { %1677 = vmatprep.mubr.bf16.mxu0 %v2738_v50  ;;  %v2370_v50 = vld [vmem:[#allocation5 + $0x430] ss:$24 sps:$4 sm:$0xff]  }
  0xe4   : > { %1546 = vmatpush1.bf16.msra.mxu1 %v2349_v24 }
  0xe5   : > { %1652 = vmatpush1.bf16.msra.mxu0 %v2352_v25  ;;  %1547 = vmatprep.subr.bf16.mxu1 %v2357_v26 }
  0xe6   : > { %1653 = vmatprep.subr.bf16.mxu0 %v2360_v27 }
  0xe8   : > { %1548 = vmatpush1.bf16.msra.mxu1 %v2355_v28 }
  0xe9   : > { %1654 = vmatpush1.bf16.msra.mxu0 %v2358_v29  ;;  %1549 = vmatprep.subr.bf16.mxu1 %v2363_v30 }
  0xea   : > { %1655 = vmatprep.subr.bf16.mxu0 %v2366_v32 }
  0xec   : > { %1550 = vmatpush1.bf16.msra.mxu1 %v2361_v34 }
  0xed   : > { %1656 = vmatpush1.bf16.msra.mxu0 %v2364_v35  ;;  %1551 = vmatprep.subr.bf16.mxu1 %v2369_v36 }
  0xee   : > { %1657 = vmatprep.subr.bf16.mxu0 %v2372_v37 }
  0xf0   : > { %1552 = vmatpush1.bf16.msra.mxu1 %v2367_v38 }
  0xf1   : > { %1658 = vmatpush1.bf16.msra.mxu0 %v2370_v50  ;;  %1553 = vmatprep.subr.bf16.mxu1 %v2375_v39 }
  0xf2   : > { %1659 = vmatprep.subr.bf16.mxu0 %v2378_v40 }
  0xf4   : > { %1554 = vmatpush1.bf16.msra.mxu1 %v2373_v41 }
  0xf5   : > { %1660 = vmatpush1.bf16.msra.mxu0 %v2376_v42  ;;  %1555 = vmatprep.subr.bf16.mxu1 %v2381_v43 }
  0xf6   : > { %1661 = vmatprep.subr.bf16.mxu0 %v2384_v44 }
  0xf8   : > { %1556 = vmatpush1.bf16.msra.mxu1 %v2379_v45 }
  0xf9   : > { %1662 = vmatpush1.bf16.msra.mxu0 %v2382_v46  ;;  %1557 = vmatprep.subr.bf16.mxu1 %v2387_v47 }
  0xfa   : > { %1663 = vmatprep.subr.bf16.mxu0 %v2390_v48 }
  0xfc   : > { %1558 = vmatpush1.bf16.msra.mxu1 %v2385_v49 }
  0xfd   : > { %1664 = vmatpush1.bf16.msra.mxu0 %v2388_v51  ;;  %1559 = vmatprep.subr.bf16.mxu1 %v2393_v52 }
  0xfe   : > { %1665 = vmatprep.subr.bf16.mxu0 %v2396_v53 }
 0x100   : > { %1560 = vmatpush1.bf16.msra.mxu1 %v2391_v54 }
 0x101   : > { %1666 = vmatpush1.bf16.msra.mxu0 %v2394_v55  ;;  %1561 = vmatprep.subr.bf16.mxu1 %v2399_v56 }
 0x102   : > { %1667 = vmatprep.subr.bf16.mxu0 %v2402_v57 }
 0x104   : > { %1562 = vmatpush1.bf16.msra.mxu1 %v2397_v58 }
 0x105   : > { %1668 = vmatpush1.bf16.msra.mxu0 %v2400_v59  ;;  %1563 = vmatprep.subr.bf16.mxu1 %v2405_v60 }
 0x106   : > { %1669 = vmatprep.subr.bf16.mxu0 %v2408_v61 }
 0x108   : > { %1564 = vmatpush1.bf16.msra.mxu1 %v2403_v62 }
 0x109   : > { %1670 = vmatpush1.bf16.msra.mxu0 %v2406_v63  ;;  %1565 = vmatprep.subr.bf16.mxu1 %v2411_v0 }
 0x10a   : > { %1671 = vmatprep.subr.bf16.mxu0 %v2414_v1 }
 0x10c   : > { %1566 = vmatpush1.bf16.msra.mxu1 %v2409_v2 }
 0x10d   : > { %1672 = vmatpush1.bf16.msra.mxu0 %v2412_v3  ;;  %1567 = vmatprep.subr.bf16.mxu1 %v2417_v6 }
 0x10e   : > { %1673 = vmatprep.subr.bf16.mxu0 %v2420_v7 }
 0x110   : > { %1568 = vmatpush1.bf16.msra.mxu1 %v2415_v8 }
 0x111   : > { %1674 = vmatpush1.bf16.msra.mxu0 %v2418_v9  ;;  %1569 = vmatprep.subr.bf16.mxu1 %v2423_v10 }
 0x112   : > { %1675 = vmatprep.subr.bf16.mxu0 %v2426_v11 }
 0x114   : > { %1570 = vmatpush1.bf16.msra.mxu1 %v2421_v12 }
 0x115   : > { %1676 = vmatpush1.bf16.msra.mxu0 %v2424_v13 }
 0x117   : > { %1572 = vmatmul.mubr.bf16.vlgmr.msra.gmra.mrb[8].mxu1 %v2746_v5 }
 0x118   : > { %1678 = vmatmul.mubr.bf16.vlgmr.msra.gmra.mrb[8].mxu0 %v2746_v5  ;;  %1581 = vmatprep.mubr.bf16.mxu1 %v2754_v31 }
 0x119   : > { %1687 = vmatprep.mubr.bf16.mxu0 %v2754_v31 }
 0x11f   : > { %1582 = vmatmul.mubr.bf16.gmra.mrb[12].mxu1 %v2760_v33 }
 0x120   : > { %1688 = vmatmul.mubr.bf16.gmra.mrb[12].mxu0 %v2760_v33 }
 0x16a   : > { %v1414_v14 = vpop.f32.mrb[0].mxu1 }
 0x16b   : > { %v1467_v15 = vpop.f32.mrb[0].mxu0  ;;  %v1416_v17 = vpop.f32.mrb[1].mxu1 }
 0x16c   : > { %v1468_v16 = vadd.f32 %v1467_v15, %v1414_v14  ;;  %v1469_v18 = vpop.f32.mrb[1].mxu0  ;;  %v1418_v20 = vpop.f32.mrb[2].mxu1 }
 0x16d   : > { %v1470_v19 = vadd.f32 %v1469_v18, %v1416_v17  ;;  %v1471_v21 = vpop.f32.mrb[2].mxu0  ;;  %v1420_v31 = vpop.f32.mrb[3].mxu1 }
 0x16e   : > { %1698 = vst [vmem:[%s2783_s17] sm:$0xff] %v1468_v16  ;;  %v1472_v5 = vadd.f32 %v1471_v21, %v1418_v20  ;;  %v1473_v33 = vpop.f32.mrb[3].mxu0 }
 0x16f   : > { %1699 = vst [vmem:[%s2783_s17 + $0x8] sm:$0xff] %v1470_v19  ;;  %v1474_v22 = vadd.f32 %v1473_v33, %v1420_v31 }
 0x170   : > { %1704 = vst [vmem:[%s2783_s17 + $0x30] sm:$0xff] %v1472_v5 }
 0x171   : > { %1705 = vst [vmem:[%s2783_s17 + $0x38] sm:$0xff] %v1474_v22 }
 0x172   : > { %v1424_v23 = vpop.f32.mrb[4].mxu1 }
 0x173   : > { %v1477_v4 = vpop.f32.mrb[4].mxu0  ;;  %v1426_v25 = vpop.f32.mrb[5].mxu1 }
 0x174   : > { %v1478_v24 = vadd.f32 %v1477_v4, %v1424_v23  ;;  %v1479_v26 = vpop.f32.mrb[5].mxu0  ;;  %v1428_v28 = vpop.f32.mrb[6].mxu1 }
 0x175   : > { %v1480_v27 = vadd.f32 %v1479_v26, %v1426_v25  ;;  %v1481_v29 = vpop.f32.mrb[6].mxu0  ;;  %v1430_v32 = vpop.f32.mrb[7].mxu1 }
 0x176   : > { %1710 = vst [vmem:[%s2783_s17 + $0x60] sm:$0xff] %v1478_v24  ;;  %v1482_v30 = vadd.f32 %v1481_v29, %v1428_v28  ;;  %v1483_v34 = vpop.f32.mrb[7].mxu0 }
 0x177   : > { %1711 = vst [vmem:[%s2783_s17 + $0x68] sm:$0xff] %v1480_v27  ;;  %v1484_v35 = vadd.f32 %v1483_v34, %v1430_v32 }
 0x178   : > { %1716 = vst [vmem:[%s2783_s17 + $0x90] sm:$0xff] %v1482_v30 }
 0x179   : > { %1717 = vst [vmem:[%s2783_s17 + $0x98] sm:$0xff] %v1484_v35 }
 0x1ea   : > { %v1573_v36 = vpop.f32.mrb[8].mxu1 }
 0x1eb   : > { %v1679_v37 = vpop.f32.mrb[8].mxu0  ;;  %1700 = vst [vmem:[%s2783_s17 + $0x10] sm:$0xff] %v1573_v36  ;;  %v1575_v38 = vpop.f32.mrb[9].mxu1 }
 0x1ec   : > { %1702 = vst [vmem:[%s2783_s17 + $0x20] sm:$0xff] %v1679_v37  ;;  %v1681_v50 = vpop.f32.mrb[9].mxu0  ;;  %1701 = vst [vmem:[%s2783_s17 + $0x18] sm:$0xff] %v1575_v38  ;;  %v1577_v39 = vpop.f32.mrb[10].mxu1 }
 0x1ed   : > { %1703 = vst [vmem:[%s2783_s17 + $0x28] sm:$0xff] %v1681_v50  ;;  %v1683_v40 = vpop.f32.mrb[10].mxu0  ;;  %1706 = vst [vmem:[%s2783_s17 + $0x40] sm:$0xff] %v1577_v39  ;;  %v1579_v41 = vpop.f32.mrb[11].mxu1 }
 0x1ee   : > { %1708 = vst [vmem:[%s2783_s17 + $0x50] sm:$0xff] %v1683_v40  ;;  %v1685_v42 = vpop.f32.mrb[11].mxu0  ;;  %1707 = vst [vmem:[%s2783_s17 + $0x48] sm:$0xff] %v1579_v41 }
 0x1ef   : > { %1709 = vst [vmem:[%s2783_s17 + $0x58] sm:$0xff] %v1685_v42 }
 0x1f2   : > { %v1583_v43 = vpop.f32.mrb[12].mxu1 }
 0x1f3   : > { %v1689_v44 = vpop.f32.mrb[12].mxu0  ;;  %1712 = vst [vmem:[%s2783_s17 + $0x70] sm:$0xff] %v1583_v43  ;;  %v1585_v45 = vpop.f32.mrb[13].mxu1 }
 0x1f4   : > { %1714 = vst [vmem:[%s2783_s17 + $0x80] sm:$0xff] %v1689_v44  ;;  %v1691_v46 = vpop.f32.mrb[13].mxu0  ;;  %1713 = vst [vmem:[%s2783_s17 + $0x78] sm:$0xff] %v1585_v45  ;;  %v1587_v47 = vpop.f32.mrb[14].mxu1 }
 0x1f5   : > { %1715 = vst [vmem:[%s2783_s17 + $0x88] sm:$0xff] %v1691_v46  ;;  %v1693_v48 = vpop.f32.mrb[14].mxu0  ;;  %1718 = vst [vmem:[%s2783_s17 + $0xa0] sm:$0xff] %v1587_v47  ;;  %v1589_v49 = vpop.f32.mrb[15].mxu1 }
 0x1f6   : > { %1720 = vst [vmem:[%s2783_s17 + $0xb0] sm:$0xff] %v1693_v48  ;;  %v1695_v51 = vpop.f32.mrb[15].mxu0  ;;  %1719 = vst [vmem:[%s2783_s17 + $0xa8] sm:$0xff] %v1589_v49 }
 0x1f7   : > { %1721 = vst [vmem:[%s2783_s17 + $0xb8] sm:$0xff] %v1695_v51 }
 0x1f8   : > { %2498 = shalt.err (!%p2495_p7)
}
 0x1f9   : > { %s2499_s24 = scalar_lea.hbm %s2808_s4, 3072  ;;  %s2503_s26 = scalar_lea.hbm %s2862_s2, 6144 }
 0x1fa   : > { %p2500_p9 = scmp.ne.s32.totalorder %s2808_s4, %s2499_s24  ;;  %p2504_p5 = scmp.lt.u32.totalorder %s2808_s4, %s2862_s2 }
 0x1fb   : > { %p2505_p11 = scmp.lt.u32.totalorder %s2503_s26, %s2499_s24  ;;  %p2507_p4 = scmp.lt.u32.totalorder %s2499_s24, %s2808_s4 }
 0x1fc   : > { %p2501_p2 = pnand %p2500_p9, %p2672_p12 }
 0x1fd   : > { %p2506_p1 = por %p2505_p11, %p2504_p5 }
 0x1fe   : > { %p2502_p0 = pneg %p2501_p2 }
 0x1ff   : > { %p2508_p6 = por %p2507_p4, %p2506_p1 }
 0x201   : > { %p2509_p8 = pnand %p2508_p6, %p2502_p0 }
 0x203   : > { %2512 = shalt.err (!%p2509_p8)
}
 0x204   : > { %s2564_s3 = smov 768   ;;  %s2565_s15 = smov 48  }
 0x205   : > { %2070 = dma.vmem_to_hbm [thread:$0]  (%p2672_p12), %s2810_s22, 3072, %s2808_s4, %s1723_s13, %s2564_s3, %s2564_s3, %s2565_s15  }
 0x206 PF: > { %s1752_s17 = sand.u32 1, %s2543_s9   ;;  %p2877_p10 = scmp.ne.s32.totalorder %s2867_s16, 0 }
 0x207   : > { %p2878_p13 = scmp.ge.s32.totalorder %s2555_s12, 2  ;;  %s1753_s27 = scalar_lea.sflag [#allocation4], %s1752_s17 }
 0x209   : > { %p2081_p3 = pnand %p2878_p13, %p2877_p10 }
 0x20b   : > { %2538 = dma.done.wait (!%p2081_p3), %s1753_s27, 3072  }
 0x20c   : > { %2540 = vsyncadd (!%p2081_p3), %s1753_s27, 4294964224  ;;  %p16_p7 = scmp.ge.s32.totalorder %s2637_s21, 4   ;;  %s2879_s9 = smov %s2547_s10 }
 0x20d   : > { %s2880_s10 = smov %s2551_s11  ;;  %s2881_s11 = smov %s2668_s8 }
 0x20e   : > { %s2882_s12 = smov %s2637_s21  ;;  %18 = sbr.rel (!%p16_p7) target bundleno = 6 (0x6), region = 77 }
 0x215   :  { %1758 = vsyncpa [#allocation3], 1 }
 0x216   :  { %1760 = vsyncpa [#allocation3 + $0x1], 1 }
 0x217   :  { %1761 = vsyncpa [#allocation6], 1 }
 0x218   :  { %1762 = vsyncpa [#allocation4], 1 }
 0x219   :  { %1764 = vsyncpa [#allocation4 + $0x1], 1 }

</bundles_post_ra>
